<compile_context>
chip_gen: v6e
topology: v6e:2x2x1
jax: 0.10.0
libtpu: 0.0.40
codegen_flags: <defaults>
</compile_context>

<pallas_src>
import functools

import jax
import jax.numpy as jnp
from jax.experimental import pallas as pl
from jax.experimental.pallas import tpu as pltpu


def _round_up(v, m):
    return (v + m - 1) // m * m


def _cdiv(a, b):
    return (a + b - 1) // b


def _vmem_budget_bytes():
    """~85% of per-core physical VMEM; 64 MiB fallback is v7x-safe."""
    try:
        cap = int(pltpu.get_tpu_info().vmem_capacity_bytes)
    except Exception:
        cap = 64 * 1024 * 1024
    return max(int(cap * 0.85), 16 * 1024 * 1024)


# ----------------------------- kernels ------------------------------------ #

def _resblock_kernel_linear_shortcut(x_ref, w0_ref, b0_ref, w1_ref, ws_ref,
                                     b1_ref, o_ref):
    """One row tile; shortcut is a second MXU dot into the same f32 accumulator.

        net = relu(x) @ w0 + b0
        out = x @ ws + relu(net) @ w1 + b1
    """
    cd = w0_ref.dtype                               # MXU compute dtype (bf16/f32)
    x = x_ref[...]                                  # (tm, in_p), already in cd
    net = jnp.dot(jnp.maximum(x, 0).astype(cd), w0_ref[...],
                  preferred_element_type=jnp.float32) + b0_ref[...]
    acc = jnp.dot(x.astype(cd), ws_ref[...],
                  preferred_element_type=jnp.float32)
    acc = acc + jnp.dot(jnp.maximum(net, 0.0).astype(cd), w1_ref[...],
                        preferred_element_type=jnp.float32)
    o_ref[...] = (acc + b1_ref[...]).astype(o_ref.dtype)


def _resblock_kernel_identity(x_ref, w0_ref, b0_ref, w1_ref, b1_ref, o_ref):
    """One row tile, identity shortcut (size_in == size_out); residual in f32."""
    cd = w0_ref.dtype
    x = x_ref[...]                                  # (tm, in_p) f32
    net = jnp.dot(jnp.maximum(x, 0.0).astype(cd), w0_ref[...],
                  preferred_element_type=jnp.float32) + b0_ref[...]
    dx = jnp.dot(jnp.maximum(net, 0.0).astype(cd), w1_ref[...],
                 preferred_element_type=jnp.float32) + b1_ref[...]
    o_ref[...] = (x.astype(jnp.float32) + dx).astype(o_ref.dtype)


# ------------------------ one-time parameter prep -------------------------- #

def prepare_params(w0, b0, w1, b1, ws=None, *, compute_dtype=jnp.bfloat16):
    """Pad/cast the block's weights once to lane-aligned (128) blocks.

    Weights are (in_features, out_features); the kernel computes x @ W.
    Returns (params_dict, (size_in, size_out)).
    """
    size_in, size_h = w0.shape
    size_out = w1.shape[1]
    in_p, h_p, out_p = (_round_up(d, 128) for d in (size_in, size_h, size_out))
    cd = compute_dtype
    f32 = jnp.float32

    def pad2(a, rows, cols, dt):
        a = a.astype(dt)
        return jnp.pad(a, ((0, rows - a.shape[0]), (0, cols - a.shape[1])))

    params = {
        "w0": pad2(w0, in_p, h_p, cd),
        "b0": pad2(b0, 1, h_p, f32),
        "w1": pad2(w1, h_p, out_p, cd),
        "b1": pad2(b1, 1, out_p, f32),
    }
    if ws is not None:
        params["ws"] = pad2(ws, in_p, out_p, cd)
    return params, (size_in, size_out)


# ------------------------------ forward ------------------------------------ #

@functools.partial(jax.jit,
                   static_argnames=("size_in", "size_out", "tile_rows"))
def resnet_block_fc_forward(x, params, *, size_in, size_out, tile_rows=512):
    """Pallas ResnetBlockFC forward given pre-padded params (see prepare_params)."""
    n = x.shape[0]
    assert x.shape[1] == size_in
    out_dtype = x.dtype

    w0_p, b0_p = params["w0"], params["b0"]
    w1_p, b1_p = params["w1"], params["b1"]
    ws_p = params.get("ws")
    linear_shortcut = ws_p is not None
    if not linear_shortcut:
        assert size_in == size_out, "identity shortcut requires size_in == size_out"

    in_p, h_p = w0_p.shape
    out_p = w1_p.shape[1]
    cd = w0_p.dtype
    cd_bytes = jnp.dtype(cd).itemsize
    pack = max(8, 32 // cd_bytes)                   # 8 f32, 16 bf16, 32 int8/fp8

    # x streams in the compute dtype on the linear-shortcut path (halves input
    # HBM bytes); identity path keeps f32 x for an exact residual add.
    x_stream_dtype = cd if linear_shortcut else x.dtype
    x_bytes = jnp.dtype(x_stream_dtype).itemsize
    out_bytes = jnp.dtype(out_dtype).itemsize

    # ---- VMEM accounting (weights single-buffered, x/out double-buffered) --
    budget = _vmem_budget_bytes()
    weight_bytes = (in_p * h_p + h_p * out_p
                    + (in_p * out_p if linear_shortcut else 0)) * cd_bytes \
        + (h_p + out_p) * 4
    per_row = (2 * (in_p * x_bytes + out_p * out_bytes)          # streamed tiles
               + h_p * 4 + h_p * cd_bytes                        # net + relu(net)
               + out_p * 4 + in_p * cd_bytes)                    # f32 acc + x cast
    tm_budget = (budget - weight_bytes) // max(per_row, 1)
    tm_budget = max(pack, tm_budget // pack * pack)

    # ---- row tile: big, packing-aligned, >= 2 grid steps for v7x megacore --
    tm = min(_round_up(tile_rows, pack), _round_up(n, pack), tm_budget)
    if _cdiv(n, tm) < 2 and n > pack:
        tm = min(tm, _round_up(_cdiv(n, 2), pack))
    grid = (_cdiv(n, tm),)

    vmem_limit = min(budget,
                     max(16 * 1024 * 1024,
                         int((weight_bytes + tm * per_row) * 1.25)))

    # ---- pad / cast x only when actually needed (feature dim -> 128) -------
    if size_in == in_p and x.dtype == jnp.dtype(x_stream_dtype):
        x_p = x
    else:
        x_p = jnp.pad(x.astype(x_stream_dtype), ((0, 0), (0, in_p - size_in)))

    x_spec = pl.BlockSpec((tm, in_p), lambda i: (i, 0))
    out_spec = pl.BlockSpec((tm, out_p), lambda i: (i, 0))
    out_shape = jax.ShapeDtypeStruct((n, out_p), out_dtype)

    def const_spec(shape):
        # Constant index_map -> resident block; single-buffered to save VMEM.
        return pl.BlockSpec(shape, lambda i: (0, 0),
                            pipeline_mode=pl.Buffered(1))

    if linear_shortcut:
        kernel = _resblock_kernel_linear_shortcut
        in_specs = [x_spec,
                    const_spec((in_p, h_p)), const_spec((1, h_p)),
                    const_spec((h_p, out_p)), const_spec((in_p, out_p)),
                    const_spec((1, out_p))]
        operands = (x_p, w0_p, b0_p, w1_p, ws_p, b1_p)
    else:
        kernel = _resblock_kernel_identity
        in_specs = [x_spec,
                    const_spec((in_p, h_p)), const_spec((1, h_p)),
                    const_spec((h_p, out_p)), const_spec((1, out_p))]
        operands = (x_p, w0_p, b0_p, w1_p, b1_p)

    out = pl.pallas_call(
        kernel,
        out_shape=out_shape,
        grid_spec=pltpu.PrefetchScalarGridSpec(
            num_scalar_prefetch=0,
            grid=grid,
            in_specs=in_specs,
            out_specs=out_spec),
        compiler_params=pltpu.CompilerParams(
            dimension_semantics=("parallel",),
            vmem_limit_bytes=vmem_limit),
    )(*operands)

    return out if out_p == size_out else out[:, :size_out]


def resnet_block_fc(x, w0, b0, w1, b1, ws=None, *, tile_rows=512,
                    compute_dtype=jnp.bfloat16):
    """Convenience one-shot wrapper (prep + forward). For repeated calls,
    call prepare_params once and reuse resnet_block_fc_forward."""
    params, (size_in, size_out) = prepare_params(
        w0, b0, w1, b1, ws, compute_dtype=compute_dtype)
    return resnet_block_fc_forward(x, params, size_in=size_in,
                                   size_out=size_out, tile_rows=tile_rows)


# ------------------------- parameter init & reference ---------------------- #

def init_params(key, size_in, size_out=None, size_h=None):
    """Deterministic init matching ResnetBlockFC.__init__ (ReLU branch)."""
    if size_out is None:
        size_out = size_in
    if size_h is None:
        size_h = min(size_in, size_out)
    k0, ks = jax.random.split(key)
    w0 = jax.random.normal(k0, (size_in, size_h), jnp.float32) * jnp.sqrt(
        2.0 / size_in)
    b0 = jnp.zeros((1, size_h), jnp.float32)
    w1 = jnp.zeros((size_h, size_out), jnp.float32)   # nn.init.zeros_
    b1 = jnp.zeros((1, size_out), jnp.float32)
    if size_in == size_out:
        ws = None
    else:
        ws = jax.random.normal(ks, (size_in, size_out), jnp.float32) * jnp.sqrt(
            2.0 / size_in)
    return w0, b0, w1, b1, ws


def reference(x, w0, b0, w1, b1, ws):
    """Pure-JAX f32 reference of the PyTorch forward."""
    net = jnp.maximum(x, 0.0) @ w0 + b0
    dx = jnp.maximum(net, 0.0) @ w1 + b1
    x_s = x @ ws if ws is not None else x
    return x_s + dx


# ------------------------------ main --------------------------------------- #

if __name__ == "__main__":
    key = jax.random.PRNGKey(0)
    kx, kx2, kw0, kb0, kw1, kb1, kws, kp2, kw1b = jax.random.split(key, 9)

    # ---- Case 1: size_in != size_out -> linear-shortcut path, bf16 MXU -----
    # N=50 is deliberately not a tile multiple -> exercises the masked
    # boundary block (no wrapper-side row padding).
    N, size_in, size_h, size_out = 50, 32, 32, 64
    x = jax.random.normal(kx, (N, size_in), jnp.float32)
    w0 = jax.random.normal(kw0, (size_in, size_h), jnp.float32) * jnp.sqrt(2.0 / size_in)
    b0 = jax.random.normal(kb0, (1, size_h), jnp.float32) * 0.1
    w1 = jax.random.normal(kw1, (size_h, size_out), jnp.float32) * 0.1
    b1 = jax.random.normal(kb1, (1, size_out), jnp.float32) * 0.1
    ws = jax.random.normal(kws, (size_in, size_out), jnp.float32) * jnp.sqrt(2.0 / size_in)

    params_bf16, (si, so) = prepare_params(w0, b0, w1, b1, ws)   # one-time prep
    out = jax.block_until_ready(
        resnet_block_fc_forward(x, params_bf16, size_in=si, size_out=so))
    ref = reference(x, w0, b0, w1, b1, ws)
    assert out.shape == (N, size_out)
    # bf16 MXU inputs (incl. bf16-streamed x) with f32 accumulation.
    assert jnp.allclose(out, ref, atol=5e-2, rtol=5e-2), float(
        jnp.max(jnp.abs(out - ref)))

    # ---- Case 2: size_in == size_out -> identity shortcut (exact f32 residual)
    N2, size2 = 64, 32
    x2 = jax.random.normal(kx2, (N2, size2), jnp.float32)
    w0b, b0b, w1b, b1b, wsb = init_params(kp2, size2)
    # module init zeros fc_1; use a nonzero fc_1 so the check is non-trivial
    w1b = jax.random.normal(kw1b, (size2, size2), jnp.float32) * 0.1
    out2 = jax.block_until_ready(resnet_block_fc(x2, w0b, b0b, w1b, b1b, wsb))
    ref2 = reference(x2, w0b, b0b, w1b, b1b, wsb)
    assert out2.shape == (N2, size2)
    assert jnp.allclose(out2, ref2, atol=5e-2, rtol=5e-2), float(
        jnp.max(jnp.abs(out2 - ref2)))

    # ---- Case 3: same as case 1 with f32 MXU inputs -> tight tolerance -----
    params_f32, _ = prepare_params(w0, b0, w1, b1, ws,
                                   compute_dtype=jnp.float32)
    out3 = jax.block_until_ready(
        resnet_block_fc_forward(x, params_f32, size_in=si, size_out=so))
    assert jnp.allclose(out3, ref, atol=1e-4, rtol=1e-4), float(
        jnp.max(jnp.abs(out3 - ref)))

    print("KERNEL_OK")
</pallas_src>

<mosaic_0001>
module attributes {stable_mosaic.version = 11 : i64} {
  func.func @_resblock_kernel_linear_shortcut(%arg0: i32, %arg1: memref<32x128xbf16, #tpu.memory_space<vmem>>, %arg2: memref<128x128xbf16, #tpu.memory_space<vmem>>, %arg3: memref<1x128xf32, #tpu.memory_space<vmem>>, %arg4: memref<128x128xbf16, #tpu.memory_space<vmem>>, %arg5: memref<128x128xbf16, #tpu.memory_space<vmem>>, %arg6: memref<1x128xf32, #tpu.memory_space<vmem>>, %arg7: memref<32x128xf32, #tpu.memory_space<vmem>>) attributes {dimension_semantics = [#tpu.dimension_semantics<parallel>], iteration_bounds = array<i64: 2>, scalar_prefetch = 0 : i64, scratch_operands = 0 : i64, tpu.core_type = #tpu.core_type<tc>, window_params = [{transform_indices = @transform_0, window_bounds = array<i64: 32, 128>}, {pipeline_mode = #tpu.pipeline_mode<synchronous>, transform_indices = @transform_1, window_bounds = array<i64: 128, 128>}, {pipeline_mode = #tpu.pipeline_mode<synchronous>, transform_indices = @transform_2, window_bounds = array<i64: 1, 128>}, {pipeline_mode = #tpu.pipeline_mode<synchronous>, transform_indices = @transform_3, window_bounds = array<i64: 128, 128>}, {pipeline_mode = #tpu.pipeline_mode<synchronous>, transform_indices = @transform_4, window_bounds = array<i64: 128, 128>}, {pipeline_mode = #tpu.pipeline_mode<synchronous>, transform_indices = @transform_5, window_bounds = array<i64: 1, 128>}, {transform_indices = @transform_6, window_bounds = array<i64: 32, 128>}]} {
    %c0 = arith.constant 0 : index
    %c0_0 = arith.constant 0 : index
    %0 = vector.load %arg1[%c0, %c0_0] : memref<32x128xbf16, #tpu.memory_space<vmem>>, vector<32x128xbf16>
    %cst = arith.constant 0.000000e+00 : bf16
    %1 = vector.broadcast %cst : bf16 to vector<32x128xbf16>
    %2 = arith.maximumf %0, %1 : vector<32x128xbf16>
    %c0_1 = arith.constant 0 : index
    %c0_2 = arith.constant 0 : index
    %3 = vector.load %arg2[%c0_1, %c0_2] : memref<128x128xbf16, #tpu.memory_space<vmem>>, vector<128x128xbf16>
    %cst_3 = arith.constant dense<0.000000e+00> : vector<32x128xf32>
    %4 = tpu.matmul %2, %3, %cst_3 {dimension_numbers = #tpu.dot_dimension_numbers<[1], [0], [0], [1], [0, 0, 1, 1], [], []>} : vector<32x128xbf16>, vector<128x128xbf16>, vector<32x128xf32> -> vector<32x128xf32>
    %c0_4 = arith.constant 0 : index
    %c0_5 = arith.constant 0 : index
    %5 = vector.load %arg3[%c0_4, %c0_5] : memref<1x128xf32, #tpu.memory_space<vmem>>, vector<1x128xf32>
    %6 = vector.broadcast %5 : vector<1x128xf32> to vector<32x128xf32>
    %7 = arith.addf %4, %6 : vector<32x128xf32>
    %c0_6 = arith.constant 0 : index
    %c0_7 = arith.constant 0 : index
    %8 = vector.load %arg5[%c0_6, %c0_7] : memref<128x128xbf16, #tpu.memory_space<vmem>>, vector<128x128xbf16>
    %cst_8 = arith.constant dense<0.000000e+00> : vector<32x128xf32>
    %9 = tpu.matmul %0, %8, %cst_8 {dimension_numbers = #tpu.dot_dimension_numbers<[1], [0], [0], [1], [0, 0, 1, 1], [], []>} : vector<32x128xbf16>, vector<128x128xbf16>, vector<32x128xf32> -> vector<32x128xf32>
    %cst_9 = arith.constant 0.000000e+00 : f32
    %10 = vector.broadcast %cst_9 : f32 to vector<32x128xf32>
    %11 = arith.maximumf %7, %10 : vector<32x128xf32>
    %12 = arith.truncf %11 : vector<32x128xf32> to vector<32x128xbf16>
    %c0_10 = arith.constant 0 : index
    %c0_11 = arith.constant 0 : index
    %13 = vector.load %arg4[%c0_10, %c0_11] : memref<128x128xbf16, #tpu.memory_space<vmem>>, vector<128x128xbf16>
    %cst_12 = arith.constant dense<0.000000e+00> : vector<32x128xf32>
    %14 = tpu.matmul %12, %13, %cst_12 {dimension_numbers = #tpu.dot_dimension_numbers<[1], [0], [0], [1], [0, 0, 1, 1], [], []>} : vector<32x128xbf16>, vector<128x128xbf16>, vector<32x128xf32> -> vector<32x128xf32>
    %15 = arith.addf %9, %14 : vector<32x128xf32>
    %c0_13 = arith.constant 0 : index
    %c0_14 = arith.constant 0 : index
    %16 = vector.load %arg6[%c0_13, %c0_14] : memref<1x128xf32, #tpu.memory_space<vmem>>, vector<1x128xf32>
    %17 = vector.broadcast %16 : vector<1x128xf32> to vector<32x128xf32>
    %18 = arith.addf %15, %17 : vector<32x128xf32>
    %c0_15 = arith.constant 0 : index
    %c0_16 = arith.constant 0 : index
    %19 = vector.load %arg7[%c0_15, %c0_16] : memref<32x128xf32, #tpu.memory_space<vmem>>, vector<32x128xf32>
    tpu.vector_store %arg7[%c0_15, %c0_16], %18 {strides = array<i32>} : memref<32x128xf32, #tpu.memory_space<vmem>>, vector<32x128xf32>,
    return
  }
  func.func @transform_0(%arg0: i32) -> (i32, i32) {
    %c0_i32 = arith.constant 0 : i32
    %c0_i32_0 = arith.constant 0 : i32
    return %arg0, %c0_i32 : i32, i32
  }
  func.func @transform_1(%arg0: i32) -> (i32, i32) {
    %c0_i32 = arith.constant 0 : i32
    %c0_i32_0 = arith.constant 0 : i32
    %c0_i32_1 = arith.constant 0 : i32
    return %c0_i32, %c0_i32_0 : i32, i32
  }
  func.func @transform_2(%arg0: i32) -> (i32, i32) {
    %c0_i32 = arith.constant 0 : i32
    %c0_i32_0 = arith.constant 0 : i32
    %c0_i32_1 = arith.constant 0 : i32
    return %c0_i32, %c0_i32_0 : i32, i32
  }
  func.func @transform_3(%arg0: i32) -> (i32, i32) {
    %c0_i32 = arith.constant 0 : i32
    %c0_i32_0 = arith.constant 0 : i32
    %c0_i32_1 = arith.constant 0 : i32
    return %c0_i32, %c0_i32_0 : i32, i32
  }
  func.func @transform_4(%arg0: i32) -> (i32, i32) {
    %c0_i32 = arith.constant 0 : i32
    %c0_i32_0 = arith.constant 0 : i32
    %c0_i32_1 = arith.constant 0 : i32
    return %c0_i32, %c0_i32_0 : i32, i32
  }
  func.func @transform_5(%arg0: i32) -> (i32, i32) {
    %c0_i32 = arith.constant 0 : i32
    %c0_i32_0 = arith.constant 0 : i32
    %c0_i32_1 = arith.constant 0 : i32
    return %c0_i32, %c0_i32_0 : i32, i32
  }
  func.func @transform_6(%arg0: i32) -> (i32, i32) {
    %c0_i32 = arith.constant 0 : i32
    %c0_i32_0 = arith.constant 0 : i32
    return %arg0, %c0_i32 : i32, i32
  }
}

</mosaic_0001>

<bundles_post_ra>
// kernel: resnet_block_fc_forward.1
= control target key start
LH: loop header
LB: loop body
LE: loop exit
PB: predicated region body
PF: predicated region fallthrough
CT: control target
= control target key end

     0   :  { %11 = vsyncpa [#allocation3], 0  ;;  %s1341_s0 = inlined_call_operand.vmem [shape: bf16[50,128], index: 0, kind: input, shape index: {}]   ;;  %s1342_s1 = inlined_call_operand.vmem [shape: bf16[128,128], index: 1, kind: input, shape index: {}]   ;;  %s1343_s2 = inlined_call_operand.vmem [shape: f32[1,128], index: 2, kind: input, shape index: {}]   ;;  %s1344_s3 = inlined_call_operand.vmem [shape: bf16[128,128], index: 3, kind: input, shape index: {}]   ;;  %s1345_s4 = inlined_call_operand.hbm [shape: bf16[128,128], index: 4, kind: input, shape index: {}]   ;;  %s1346_s5 = inlined_call_operand.vmem [shape: f32[1,128], index: 5, kind: input, shape index: {}]   ;;  %s1347_s6 = inlined_call_operand.hbm [shape: f32[50,128], index: 6, kind: output, shape index: {}]  }
   0x1   :  { %12 = vsyncpa [#allocation4], 0 }
   0x2   :  { %14 = vsyncpa [#allocation4 + $0x1], 0  ;;  %s1139_s21 = smov 0   ;;  %s1141_s22 = smov 0  }
   0x3   :  { %s1143_s23 = smov 0   ;;  %s1145_s24 = smov 0  }
   0x4 LB: > { %s1160_s25 = sadd.s32 4294967295, %s1095_s24   ;;  %s786_s26 = sadd.s32 4294967294, %s1095_s24   ;;  %s1095_s24 = sphi %s1145_s24, %s1355_s24   ;;  %s1091_s23 = sphi %s1143_s23, %s1354_s23   ;;  %s1087_s22 = sphi %s1141_s22, %s1353_s22   ;;  %s1083_s21 = sphi %s1139_s21, %s1352_s21  }
   0x5   : > { %s1164_s27 = sadd.s32 1, %s1095_s24   ;;  %s158_s28 = sadd.s32 1, %s1091_s23 }
   0x6   : > { %s155_s29 = ssub.s32 %s1095_s24, %s1164_s27  ;;  %p168_p0 = scmp.ne.s32.totalorder %s1091_s23, %s1087_s22 }
   0x7   : > { %p156_p1 = scmp.eq.s32.totalorder %s155_s29, 0  ;;  %p169_p2 = scmp.eq.s32.totalorder %s1160_s25, 1 }
   0x8   : > { %p174_p3 = scmp.ne.s32.totalorder %s1087_s22, %s1083_s21  ;;  %p175_p4 = scmp.eq.s32.totalorder %s786_s26, 1 }
   0x9   : > { %s1175_s30 = scalar_select %p156_p1, %s1091_s23, %s158_s28  }
   0xa   : > { %p1177_p5 = por %p169_p2, %p168_p0  ;;  %p1181_p6 = por %p175_p4, %p174_p3 }
   0xb   : > { %p787_p7 = scmp.ge.s32.totalorder %s1095_s24, 1  ;;  %p182_p8 = scmp.lt.s32.totalorder %s1095_s24, 3 }
   0xc   : > { %s1349_s8 = scalar_select %p1181_p6, 1, 0 }
   0xd   : > { %p938_p9 = scmp.eq.s32.totalorder %s1160_s25, 0  ;;  %p1188_p10 = pnand %p787_p7, %p182_p8 }
   0xe   : > { %s1097_s10 = smov [#allocation2]  }
   0xf   : > { %s203_s11 = sshll.u32 %s1097_s10, 4  ;;  %p930_p11 = pneg %p1188_p10  ;;  %s204_s11 = int_to_ptr.vmem [resolvable:$true] %s203_s11 }
  0x10   : > { %s1016_s12 = scalar_lea.vmem %s204_s11, 1024  ;;  %p1024_p3 = scmp.lt.s32.totalorder %s204_s11, %s204_s11 }
  0x11   : > { %p931_p12 = pnand %p938_p9, %p930_p11  ;;  %p1017_p0 = scmp.ne.s32.totalorder %s204_s11, %s1016_s12 }
  0x12   : > { %p1025_p4 = scmp.lt.s32.totalorder %s1016_s12, %s1016_s12 }
  0x13   : > { %p1007_p13 = pneg %p931_p12 }
  0x14   : > { %p1026_p6 = por %p1025_p4, %p1024_p3 }
  0x15   : > { %p1019_p1 = pnand %p1017_p0, %p1007_p13 }
  0x17   : > { %p1020_p2 = pneg %p1019_p1 }
  0x19   : > { %p1027_p7 = pnand %p1026_p6, %p1020_p2 }
  0x1b   : > { %1030 = shalt.err (!%p1027_p7)
}
  0x1c   : > { %s1098_s13 = smov 64   ;;  %s1099_s14 = smov 4  }
  0x1d   : > { %933 = dma.hbm_to_vmem [thread:$0]  (!%p931_p12), %s1345_s4, 1024, %s204_s11, [#allocation3], %s1098_s13, %s1098_s13, %s1099_s14  }
  0x1e   : > { %239 = sbr.rel (%p1188_p10) target bundleno = 506 (0x1fa), region = 44 }
  0x23   : > { %1074 = dma.done.wait (%p938_p9), [#allocation3], 1024  }
  0x24   : > { %1076 = vsyncadd (%p938_p9), [#allocation3], 4294966272  ;;  %s1206_s17 = sshll.u32 %s1160_s25, 2  ;;  %v979_v0 = vld [vmem:[%s1342_s1 + $0x38] sm:$0xff]   ;;  %v980_v1 = vld [vmem:[%s1342_s1 + $0x30] sm:$0xff]   ;;  %v1100_v6 = vmov 0  }
  0x25   : > { %p278_p6 = scmp.lt.s32.totalorder %s1206_s17, 6  ;;  %865 = vmatprep.subr.bf16.mxu0 %v979_v0  ;;  %v981_v2 = vld [vmem:[%s1342_s1 + $0x28] sm:$0xff]   ;;  %v982_v3 = vld [vmem:[%s1342_s1 + $0x20] sm:$0xff]   ;;  %v983_v9 = vld [vmem:[%s1342_s1 + $0x18] sm:$0xff]   ;;  %s270_s15 = sand.u32 1, %s1087_s22  }
  0x26   : > { %866 = vmatpush3.bf16.msra.mxu0 %v979_v0  ;;  %v989_v11 = vld [vmem:[%s1344_s3 + $0x38] sm:$0xff]   ;;  %v991_v12 = vld [vmem:[%s1344_s3 + $0x30] sm:$0xff]   ;;  %v993_v14 = vld [vmem:[%s1344_s3 + $0x28] sm:$0xff]   ;;  %s792_s16 = sshll.u32 %s270_s15, 5  ;;  %s1282_s26 = scalar_lea.sflag [#allocation4], %s270_s15 }
  0x27   : > { %s279_s18 = scalar_select %p278_p6, %s1206_s17, 6  ;;  %867 = vmatprep.subr.bf16.mxu0 %v980_v1  ;;  %885 = vmatprep.subr.bf16.mxu1 %v989_v11  ;;  %v984_v13 = vld [vmem:[%s1342_s1 + $0x10] sm:$0xff]   ;;  %v985_v15 = vld [vmem:[%s1342_s1 + $0x8] sm:$0xff]   ;;  %v995_v16 = vld [vmem:[%s1344_s3 + $0x20] sm:$0xff]  }
  0x28   : > { %886 = vmatpush3.bf16.msra.mxu1 %v989_v11  ;;  %v986_v19 = vld [vmem:[%s1342_s1] sm:$0xff]   ;;  %v997_v20 = vld [vmem:[%s1344_s3 + $0x18] sm:$0xff]   ;;  %v988_v25 = vld [vmem:[#allocation2 + $0x30] sm:$0xff]   ;;  %s272_s20 = scalar_lea.vmem [#allocation5], %s792_s16 }
  0x29   : > { %s794_s29 = sshll.u32 %s279_s18, 2  ;;  %887 = vmatprep.subr.bf16.mxu1 %v991_v12  ;;  %v987_v23 = vld [vmem:[#allocation2 + $0x38] sm:$0xff]   ;;  %v990_v26 = vld [vmem:[#allocation2 + $0x28] sm:$0xff]   ;;  %v992_v27 = vld [vmem:[#allocation2 + $0x20] sm:$0xff]  }
  0x2a   : > { %s1222_s13 = scalar_lea.vmem %s1341_s0, %s794_s29  ;;  %868 = vmatpush3.bf16.msra.mxu0 %v980_v1  ;;  %v994_v28 = vld [vmem:[#allocation2 + $0x18] sm:$0xff]   ;;  %v996_v29 = vld [vmem:[#allocation2 + $0x10] sm:$0xff]   ;;  %v998_v30 = vld [vmem:[#allocation2 + $0x8] sm:$0xff]  }
  0x2b   : > { %869 = vmatprep.subr.bf16.mxu0 %v981_v2  ;;  %v1228_v4 = vld [vmem:[%s1222_s13] sm:$0xf]  ;;  %v1231_v5 = vld [vmem:[%s1222_s13 + $0x4] sm:$0xf]  ;;  %v295_v17 = vld [vmem:[%s1222_s13 + $0x8] sm:$0xf] }
  0x2c   : > { %v297_v7 = vmax.bf16 %v1100_v6, %v1228_v4  ;;  %v298_v8 = vmax.bf16 %v1100_v6, %v1231_v5  ;;  %888 = vmatpush3.bf16.msra.mxu1 %v991_v12  ;;  %v296_v18 = vld [vmem:[%s1222_s13 + $0xc] sm:$0xf]  ;;  %v299_v21 = vmax.bf16 %v1100_v6, %v295_v17  ;;  %v999_v31 = vld [vmem:[%s1344_s3 + $0x10] sm:$0xff]   ;;  %v1000_v32 = vld [vmem:[#allocation2] sm:$0xff]   ;;  %v814_v34 = vcombine.low %v1228_v4, %v1231_v5  ;;  %s701_s13 = ssub.s32 (%p1177_p5), 7, %s1206_s17 }
  0x2d   : > { %889 = vmatprep.subr.bf16.mxu1 %v993_v14  ;;  %v300_v22 = vmax.bf16 %v1100_v6, %v296_v18  ;;  %v1001_v33 = vld [vmem:[%s1344_s3 + $0x8] sm:$0xff]   ;;  %v815_v35 = vcombine.low %v295_v17, %v296_v18  ;;  %v1004_v36 = vld [vmem:[%s1344_s3] sm:$0xff]   ;;  %p702_p8 = scmp.lt.s32.totalorder (%p1177_p5), %s701_s13, 4 }
  0x2e   : > { %870 = vmatpush3.bf16.msra.mxu0 %v981_v2  ;;  %v796_v10 = vcombine.low %v297_v7, %v298_v8  ;;  %v795_v39 = vld [vmem:[%s1343_s2] ss:$0 sm:$0xff] }
  0x2f   : > { %871 = vmatprep.subr.bf16.mxu0 %v982_v3  ;;  %v797_v24 = vcombine.low %v299_v21, %v300_v22  ;;  %v824_v55 = vld [vmem:[%s1346_s5] ss:$0 sm:$0xff] }
  0x30   : > { %881 = vmatprep.mubr.bf16.mxu0 %v796_v10  ;;  %890 = vmatpush3.bf16.msra.mxu1 %v993_v14 }
  0x31   : > { %891 = vmatprep.subr.bf16.mxu1 %v995_v16 }
  0x32   : > { %872 = vmatpush3.bf16.msra.mxu0 %v982_v3 }
  0x33   : > { %873 = vmatprep.subr.bf16.mxu0 %v983_v9 }
  0x34   : > { %892 = vmatpush3.bf16.msra.mxu1 %v995_v16 }
  0x35   : > { %893 = vmatprep.subr.bf16.mxu1 %v997_v20 }
  0x36   : > { %874 = vmatpush3.bf16.msra.mxu0 %v983_v9 }
  0x37   : > { %875 = vmatprep.subr.bf16.mxu0 %v984_v13 }
  0x38   : > { %894 = vmatpush3.bf16.msra.mxu1 %v997_v20 }
  0x39   : > { %895 = vmatprep.subr.bf16.mxu1 %v999_v31 }
  0x3a   : > { %876 = vmatpush3.bf16.msra.mxu0 %v984_v13 }
  0x3b   : > { %877 = vmatprep.subr.bf16.mxu0 %v985_v15 }
  0x3c   : > { %896 = vmatpush3.bf16.msra.mxu1 %v999_v31 }
  0x3d   : > { %897 = vmatprep.subr.bf16.mxu1 %v1001_v33 }
  0x3e   : > { %878 = vmatpush3.bf16.msra.mxu0 %v985_v15 }
  0x3f   : > { %879 = vmatprep.subr.bf16.mxu0 %v986_v19 }
  0x40   : > { %898 = vmatpush3.bf16.msra.mxu1 %v1001_v33 }
  0x41   : > { %899 = vmatprep.subr.bf16.mxu1 %v1004_v36 }
  0x42   : > { %880 = vmatpush3.bf16.msra.mxu0 %v986_v19 }
  0x43   : > { %905 = vmatprep.subr.bf16.mxu0 %v987_v23 }
  0x44   : > { %900 = vmatpush3.bf16.msra.mxu1 %v1004_v36 }
  0x45   : > { %882 = vmatmul.mubr.bf16.vlgmr.msra.gmra.mxu0 %v797_v24 }
  0x46   : > { %906 = vmatpush3.bf16.msra.mxu0 %v987_v23  ;;  %921 = vmatprep.mubr.bf16.mxu0 %v814_v34 }
  0x47   : > { %907 = vmatprep.subr.bf16.mxu0 %v988_v25 }
  0x4a   : > { %908 = vmatpush3.bf16.msra.mxu0 %v988_v25 }
  0x4b   : > { %909 = vmatprep.subr.bf16.mxu0 %v990_v26 }
  0x4e   : > { %910 = vmatpush3.bf16.msra.mxu0 %v990_v26 }
  0x4f   : > { %911 = vmatprep.subr.bf16.mxu0 %v992_v27 }
  0x52   : > { %912 = vmatpush3.bf16.msra.mxu0 %v992_v27 }
  0x53   : > { %913 = vmatprep.subr.bf16.mxu0 %v994_v28 }
  0x56   : > { %914 = vmatpush3.bf16.msra.mxu0 %v994_v28 }
  0x57   : > { %915 = vmatprep.subr.bf16.mxu0 %v996_v29 }
  0x5a   : > { %916 = vmatpush3.bf16.msra.mxu0 %v996_v29 }
  0x5b   : > { %917 = vmatprep.subr.bf16.mxu0 %v998_v30 }
  0x5e   : > { %918 = vmatpush3.bf16.msra.mxu0 %v998_v30 }
  0x5f   : > { %919 = vmatprep.subr.bf16.mxu0 %v1000_v32 }
  0x62   : > { %920 = vmatpush3.bf16.msra.mxu0 %v1000_v32 }
  0x65   : > { %922 = vmatmul.mubr.bf16.vlgmr.msra.gmra.mxu0 %v815_v35 }
 0x105   : > { %v883_v37 = vpop.f32.mrf.mxu0 }
 0x106   : > { %v427_v43 = vadd.f32 %v883_v37, %v795_v39 }
 0x107   : > { %v418_v38 = vpop.f32.mrf.mxu0 }
 0x108   : > { %v419_v41 = vadd.f32 %v795_v39, %v418_v38  ;;  %v451_v49 = vmax.f32 %v427_v43, 0.0 }
 0x109   : > { %v884_v40 = vpop.f32.mrf.mxu0 }
 0x10a   : > { %v430_v42 = vadd.f32 %v884_v40, %v795_v39  ;;  %v449_v47 = vmax.f32 %v419_v41, 0.0 }
 0x10b   : > { %v421_v44 = vpop.f32.mrf.mxu0 }
 0x10c   : > { %v422_v45 = vadd.f32 %v795_v39, %v421_v44  ;;  %v452_v46 = vmax.f32 %v430_v42, 0.0 }
 0x10e   : > { %v450_v48 = vmax.f32 %v422_v45, 0.0  ;;  %v454_v51 = vpack.c.bf16 %v452_v46, %v451_v49 }
 0x110   : > { %v453_v50 = vpack.c.bf16 %v450_v48, %v449_v47 }
 0x112   : > { %901 = vmatprep.mubr.bf16.mxu1 %v453_v50 }
 0x113   : > { %902 = vmatmul.mubr.bf16.vlgmr.msra.gmra.mxu1 %v454_v51 }
 0x125   : > { %v923_v52 = vpop.f32.mrf.mxu0 }
 0x127   : > { %v662_v53 = vpop.f32.mrf.mxu0 }
 0x129   : > { %v924_v57 = vpop.f32.mrf.mxu0 }
 0x12b   : > { %v665_v0 = vpop.f32.mrf.mxu0 }
 0x1d3   : > { %v903_v54 = vpop.f32.mrf.mxu1 }
 0x1d4   : > { %v671_v56 = vadd.f32 %v923_v52, %v903_v54 }
 0x1d5   : > { %v553_v58 = vpop.f32.mrf.mxu1 }
 0x1d6   : > { %v686_v59 = vadd.f32 %v824_v55, %v671_v56  ;;  %v663_v60 = vadd.f32 %v662_v53, %v553_v58 }
 0x1d7   : > { %v904_v61 = vpop.f32.mrf.mxu1 }
 0x1d8   : > { %690 = vst [vmem:[%s272_s20 + $0x10] sm:$0xff] %v686_v59  ;;  %v684_v62 = vadd.f32 %v824_v55, %v663_v60  ;;  %v674_v63 = vadd.f32 %v924_v57, %v904_v61 }
 0x1d9   : > { %v556_v1 = vpop.f32.mrf.mxu1 }
 0x1da   : > { %688 = vst [vmem:[%s272_s20] sm:$0xff] %v684_v62  ;;  %v687_v2 = vadd.f32 %v824_v55, %v674_v63  ;;  %v666_v3 = vadd.f32 %v665_v0, %v556_v1  ;;  %699 = sbr.rel (!%p1177_p5) target bundleno = 506 (0x1fa), region = 52 }
 0x1dc   : > { %691 = vst [vmem:[%s272_s20 + $0x18] sm:$0xff] %v687_v2  ;;  %v685_v4 = vadd.f32 %v824_v55, %v666_v3 }
 0x1de   : > { %689 = vst [vmem:[%s272_s20 + $0x8] sm:$0xff] %v685_v4 }
 0x1df   : > { %s1357_s13 = smov (!%p702_p8, %s701_s13), 4 }
 0x1e0   : > { %s1287_s28 = sshll.u32 %s1357_s13, 7 }
 0x1e1   : > { %s706_s29 = ssub.s32 512, %s1287_s28 }
 0x1e2   : > { %707 = vsyncadd %s1282_s26, %s706_s29  ;;  %p828_p9 = scmp.ne.s32.totalorder %s1287_s28, 0  ;;  %s834_s9 = sshll.u32 %s1160_s25, 9 }
 0x1e3   : > { %s1296_s7 = scalar_lea.hbm %s1347_s6, %s834_s9  ;;  %s712_s12 = sshll.u32 %s272_s20, 4  ;;  %s1298_s12 = int_to_ptr.vmem [resolvable:$true] %s712_s12 }
 0x1e4   : > { %s1031_s17 = scalar_lea.vmem %s1298_s12, %s1287_s28  ;;  %s1101_s14 = smov [#allocation5]  }
 0x1e5   : > { %p1032_p5 = scmp.ne.s32.totalorder %s1298_s12, %s1031_s17  ;;  %s1035_s15 = sshll.u32 %s1101_s14, 4  ;;  %s1036_s15 = int_to_ptr.vmem [resolvable:$false] %s1035_s15 }
 0x1e6   : > { %s1037_s25 = scalar_lea.vmem %s1036_s15, 1024  ;;  %p1038_p12 = scmp.lt.s32.totalorder %s1298_s12, %s1036_s15 }
 0x1e7   : > { %p1033_p10 = pnand %p1032_p5, %p828_p9  ;;  %p1039_p13 = scmp.lt.s32.totalorder %s1037_s25, %s1031_s17 }
 0x1e9   : > { %p1034_p11 = pneg %p1033_p10  ;;  %p1040_p0 = por %p1039_p13, %p1038_p12 }
 0x1eb   : > { %p1041_p1 = pnand %p1040_p0, %p1034_p11 }
 0x1ed   : > { %1044 = shalt.err (!%p1041_p1)
}
 0x1ee   : > { %s1045_s16 = scalar_lea.hbm %s1296_s7, %s1287_s28  ;;  %s1049_s20 = scalar_lea.hbm %s1347_s6, 896 }
 0x1ef   : > { %p1046_p2 = scmp.ne.s32.totalorder %s1296_s7, %s1045_s16  ;;  %p1050_p7 = scmp.lt.s32.totalorder %s1296_s7, %s1347_s6 }
 0x1f0   : > { %p1051_p6 = scmp.lt.s32.totalorder %s1049_s20, %s1045_s16 }
 0x1f1   : > { %p1047_p3 = pnand %p1046_p2, %p828_p9 }
 0x1f2   : > { %p1052_p8 = por %p1051_p6, %p1050_p7 }
 0x1f3   : > { %p1048_p4 = pneg %p1047_p3 }
 0x1f5   : > { %p1053_p5 = pnand %p1052_p8, %p1048_p4 }
 0x1f7   : > { %1056 = shalt.err (!%p1053_p5)
}
 0x1f8   : > { %s1102_s9 = smov 128   ;;  %s1103_s10 = smov 8  }
 0x1f9   : > { %718 = dma.vmem_to_hbm [thread:$0]  (%p828_p9), %s1298_s12, %s1287_s28, %s1296_s7, %s1282_s26, %s1102_s9, %s1102_s9, %s1103_s10  }
 0x1fa PF: > { %p940_p10 = scmp.ge.s32.totalorder %s1095_s24, 2  ;;  %s727_s11 = sand.u32 1, %s1083_s21  }
 0x1fb   : > { %p1351_p11 = scmp.ne.s32.totalorder %s1349_s8, 0  ;;  %s728_s17 = scalar_lea.sflag [#allocation4], %s727_s11 }
 0x1fd   : > { %p935_p12 = pnand %p940_p10, %p1351_p11 }
 0x1ff   : > { %p936_p13 = pneg %p935_p12 }
 0x201   : > { %1078 = dma.done.wait (%p936_p13), %s728_s17, 512  }
 0x202   : > { %1080 = vsyncadd (%p936_p13), %s728_s17, 4294966784  ;;  %p17_p0 = scmp.ge.s32.totalorder %s1164_s27, 4   ;;  %s1352_s21 = smov %s1087_s22 }
 0x203   : > { %s1353_s22 = smov %s1091_s23  ;;  %s1354_s23 = smov %s1175_s30 }
 0x204   : > { %s1355_s24 = smov %s1164_s27  ;;  %19 = sbr.rel (!%p17_p0) target bundleno = 4 (0x4), region = 84 }
 0x209   :  { %733 = vsyncpa [#allocation3], 1 }
 0x20a   :  { %735 = vsyncpa [#allocation3 + $0x1], 1 }
 0x20b   :  { %736 = vsyncpa [#allocation4], 1 }
 0x20c   :  { %738 = vsyncpa [#allocation4 + $0x1], 1 }

</bundles_post_ra>
